<compile_context>
chip_gen: v6e
topology: v6e:2x2x1
jax: 0.10.0
libtpu: 0.0.40
codegen_flags: <defaults>
</compile_context>

<pallas_src>
import functools

import numpy as np
import jax
import jax.numpy as jnp
from jax.experimental import pallas as pl
from jax.experimental.pallas import tpu as pltpu

_LANE = 128
_SUBLANE = 8
_LANE_DENSE_MAX_CLASSES = 64   # below this, class-on-lanes wastes >50% of every vreg


def _cdiv(a, b):
    return (a + b - 1) // b


def _round_up(a, b):
    return _cdiv(a, b) * b


def _vmem_caps():
    """Generation-aware (block_budget_bytes, scoped_vmem_limit_bytes).

    v7x: 64 MiB physical per TC -> 32 MiB double-buffered working set, 48 MiB limit.
    v5e/v6e: 128 MiB physical  -> 64 MiB working set, 96 MiB limit.
    """
    cap = 64 * 1024 * 1024  # conservative default = v7x per-TC VMEM
    try:
        info = pltpu.get_tpu_info()
        cap = int(getattr(info, "vmem_capacity_bytes", cap)) or cap
    except Exception:
        pass
    block_budget = cap // 2
    vmem_limit = min((cap * 3) // 4, cap - (8 << 20))
    return block_budget, vmem_limit


def _choose_tile(n, other_dim, align, block_budget_bytes):
    """Tile extent along the frames axis.

    Byte-budgeted (double-buffered bf16 in + bf16 out), aligned, and capped so the
    grid has >= 2 blocks when the input is large enough (both v7x TensorCores).
    """
    bytes_per_unit = 2 * (2 + 2) * max(other_dim, 1)  # 2 bufs * (bf16 in + bf16 out)
    tile = max(align, (block_budget_bytes // bytes_per_unit) // align * align)
    # At least 2 blocks for megacore sharding when there is enough work to split.
    half = max(align, _round_up(_cdiv(n, 2), align))
    tile = min(tile, half)
    if tile >= n:
        return n  # single full-extent block (full array dims are always legal)
    return tile


# ---------------------------------------------------------------------------
# Kernels
# ---------------------------------------------------------------------------

def _softmax_sublane_kernel(x_ref, o_ref):
    # Lane-dense layout: x_ref is (n_classes, TILE_frames) bf16 logits.
    # Classes live on sublanes -> the reduce is a cheap packed sublane reduce,
    # and every store is a full-width (128-lane) vst.
    x = x_ref[...].astype(jnp.float32)
    m = jnp.max(x, axis=0, keepdims=True)
    e = jnp.exp(x - m)
    s = jnp.sum(e, axis=0, keepdims=True)
    # Exact normalization: memory-bound kernel, exact divide is free and avoids
    # the approx-reciprocal score-reordering concern from review.
    o_ref[...] = (e / s).astype(o_ref.dtype)


def _softmax_lastdim_kernel(x_ref, o_ref):
    # Frames-major layout for wide class axes: x_ref is (TILE_frames, n_classes).
    x = x_ref[...].astype(jnp.float32)
    m = jnp.max(x, axis=-1, keepdims=True)
    e = jnp.exp(x - m)
    s = jnp.sum(e, axis=-1, keepdims=True)
    o_ref[...] = (e / s).astype(o_ref.dtype)


# ---------------------------------------------------------------------------
# pallas_call wrappers (jit-cached per shape/tile)
# ---------------------------------------------------------------------------

@functools.partial(jax.jit, static_argnames=("tile", "vmem_limit"))
def _softmax_lane_dense(y_pred_t, tile, vmem_limit):
    """y_pred_t: (n_classes, n_frames) bf16 -> (n_classes, n_frames) bf16 probs."""
    c, n = y_pred_t.shape
    return pl.pallas_call(
        _softmax_sublane_kernel,
        out_shape=jax.ShapeDtypeStruct((c, n), jnp.bfloat16),
        grid_spec=pltpu.PrefetchScalarGridSpec(
            num_scalar_prefetch=0,
            grid=(_cdiv(n, tile),),
            in_specs=[pl.BlockSpec((c, tile), lambda i: (0, i))],
            out_specs=pl.BlockSpec((c, tile), lambda i: (0, i)),
        ),
        compiler_params=pltpu.CompilerParams(
            dimension_semantics=("parallel",),
            vmem_limit_bytes=vmem_limit),
    )(y_pred_t)


@functools.partial(jax.jit, static_argnames=("tile", "vmem_limit"))
def _softmax_frames_major(y_pred, tile, vmem_limit):
    """y_pred: (n_frames, n_classes) bf16 -> (n_frames, n_classes) bf16 probs."""
    n, c = y_pred.shape
    # TODO(synk): for very wide class axes that are not a multiple of 128 the
    # trailing lane group uses masked stores; pad the output class axis only if a
    # bundle dump shows the store slot is binding.
    return pl.pallas_call(
        _softmax_lastdim_kernel,
        out_shape=jax.ShapeDtypeStruct((n, c), jnp.bfloat16),
        grid_spec=pltpu.PrefetchScalarGridSpec(
            num_scalar_prefetch=0,
            grid=(_cdiv(n, tile),),
            in_specs=[pl.BlockSpec((tile, c), lambda i: (i, 0))],
            out_specs=pl.BlockSpec((tile, c), lambda i: (i, 0)),
        ),
        compiler_params=pltpu.CompilerParams(
            dimension_semantics=("parallel",),
            vmem_limit_bytes=vmem_limit),
    )(y_pred)


def map_softmax(y_pred):
    """Softmax over the class axis of (n_frames, n_classes) logits.

    Returns (device_probs_bf16, transposed): if transposed is True the device
    array is laid out (n_classes, n_frames) (lane-dense path for small n_classes)
    and should be transposed on the host when materialized.
    """
    y_pred = np.asarray(y_pred)
    n, c = y_pred.shape
    block_budget, vmem_limit = _vmem_caps()
    if c <= _LANE_DENSE_MAX_CLASSES:
        # Host-side transpose + bf16 cast: ship (n_classes, n_frames) bf16 so the
        # kernel reads/writes fully lane-dense tiles (frames on the 128-lane axis).
        x = jnp.asarray(np.asarray(y_pred.T, dtype=jnp.bfloat16, order="C"))
        tile = _choose_tile(n, c, _LANE, block_budget)
        return _softmax_lane_dense(x, tile=tile, vmem_limit=vmem_limit), True
    x = jnp.asarray(np.asarray(y_pred, dtype=jnp.bfloat16, order="C"))
    tile = _choose_tile(n, c, _SUBLANE, block_budget)
    return _softmax_frames_major(x, tile=tile, vmem_limit=vmem_limit), False


# ---------------------------------------------------------------------------
# Minimal stand-in for the PyTorch mAP module (forward pass only)
# ---------------------------------------------------------------------------

class MAPMetric:
    def __init__(self, n_classes):
        self.n_classes = n_classes
        self.all_gts, self.all_preds = [], []
        self.seen_idx = set()
        # TODO(synk): end_epoch() uses sklearn.average_precision_score and Logger
        # hooks; host-side only, no Pallas equivalent.

    def forward(self, net_out, batch):
        # Python-set based dedup of already-seen batch items (host glue).
        unseen = np.array([idx not in self.seen_idx for idx in batch["idx"]],
                          dtype=bool)
        if not unseen.any():
            return {}
        y_true = np.asarray(batch["y_true"])[unseen].reshape(-1)
        n_frames = y_true.shape[0]
        try:
            y_pred = np.asarray(net_out["y_pred"])[unseen].reshape(n_frames, -1)
        except Exception:
            return {}
        if y_pred.shape[1] != self.n_classes:
            raise ValueError(
                f"y_pred has {y_pred.shape[1]} classes, expected {self.n_classes}")

        # One-hot ground truth is exact 0/1 label metadata: build it host-side.
        y_true_cat = np.zeros((n_frames, self.n_classes), dtype=np.float32)
        y_true_cat[np.arange(n_frames), y_true] = 1.0

        probs_dev, transposed = map_softmax(y_pred)

        # No per-batch device sync / D2H copy: accumulate the device array and
        # materialize lazily (end_epoch style) so the transfer hides behind the
        # next batch's forward.
        self.all_gts.append(y_true_cat)
        self.all_preds.append((probs_dev, transposed))
        self.seen_idx.update(int(i) for i in batch["idx"])
        return {}

    def materialize_preds(self):
        """Lazily convert accumulated device predictions to host f32 arrays."""
        out = []
        for dev, transposed in self.all_preds:
            a = np.asarray(jax.device_get(dev)).astype(np.float32)
            out.append(a.T if transposed else a)
        return out


if __name__ == "__main__":
    key = jax.random.PRNGKey(0)
    B, T, n_classes = 2, 8, 8          # 2 items, 8 frames each, 8 classes
    k1, k2 = jax.random.split(key)

    y_true = jax.random.randint(k1, (B, T), 0, n_classes, dtype=jnp.int32)
    y_pred = jax.random.normal(k2, (B, T, n_classes), dtype=jnp.float32)

    metric = MAPMetric(n_classes)
    batch = {"idx": list(range(B)), "y_true": np.asarray(y_true)}
    net_out = {"y_pred": np.asarray(y_pred)}

    metric.forward(net_out, batch)

    # Block once on the device result (harness requirement), then materialize.
    jax.block_until_ready(metric.all_preds[0][0])
    preds = metric.materialize_preds()

    gt = metric.all_gts[0]
    pr = preds[0]
    y_true_flat = np.asarray(y_true).reshape(-1)
    ref_onehot = np.eye(n_classes, dtype=np.float32)[y_true_flat]
    ref_soft = np.asarray(
        jax.nn.softmax(jnp.asarray(y_pred).reshape(-1, n_classes), axis=-1))
    assert gt.shape == (B * T, n_classes) and pr.shape == (B * T, n_classes)
    assert np.allclose(gt, ref_onehot), "one-hot mismatch"
    # bf16 logits in + bf16 probabilities out -> ~1e-2 absolute tolerance
    assert np.allclose(pr, ref_soft, atol=2e-2), "softmax mismatch"
    assert np.allclose(pr.sum(-1), 1.0, atol=2e-2), "softmax rows do not sum to 1"

    # Second call with same idx -> dedup path (returns empty, no kernel call).
    metric.forward(net_out, batch)
    assert len(metric.all_gts) == 1

    # Also exercise the wide-class (frames-major) path once.
    C2, N2 = 527, 96
    wide = jax.random.normal(jax.random.PRNGKey(1), (N2, C2), dtype=jnp.float32)
    probs_w, t_w = map_softmax(np.asarray(wide))
    probs_w = np.asarray(jax.block_until_ready(probs_w)).astype(np.float32)
    if t_w:
        probs_w = probs_w.T
    ref_w = np.asarray(jax.nn.softmax(wide, axis=-1))
    assert np.allclose(probs_w, ref_w, atol=1e-2), "wide-class softmax mismatch"

    print("KERNEL_OK")
</pallas_src>

<mosaic_0001>
module attributes {stable_mosaic.version = 11 : i64} {
  func.func @_softmax_sublane_kernel(%arg0: i32, %arg1: memref<8x16xbf16, #tpu.memory_space<vmem>>, %arg2: memref<8x16xbf16, #tpu.memory_space<vmem>>) attributes {dimension_semantics = [#tpu.dimension_semantics<parallel>], iteration_bounds = array<i64: 1>, scalar_prefetch = 0 : i64, scratch_operands = 0 : i64, tpu.core_type = #tpu.core_type<tc>, window_params = [{transform_indices = @transform_0, window_bounds = array<i64: 8, 16>}, {transform_indices = @transform_1, window_bounds = array<i64: 8, 16>}]} {
    %c0 = arith.constant 0 : index
    %c0_0 = arith.constant 0 : index
    %0 = vector.load %arg1[%c0, %c0_0] : memref<8x16xbf16, #tpu.memory_space<vmem>>, vector<8x16xbf16>
    %1 = arith.extf %0 : vector<8x16xbf16> to vector<8x16xf32>
    %cst = arith.constant dense<0xFF800000> : vector<16xf32>
    %2 = vector.multi_reduction <maximumf>, %1, %cst [0] : vector<8x16xf32> to vector<16xf32>
    %3 = vector.shape_cast %2 : vector<16xf32> to vector<1x16xf32>
    %4 = vector.broadcast %3 : vector<1x16xf32> to vector<8x16xf32>
    %5 = arith.subf %1, %4 : vector<8x16xf32>
    %6 = math.exp %5 : vector<8x16xf32>
    %cst_1 = arith.constant dense<0.000000e+00> : vector<16xf32>
    %7 = vector.multi_reduction <add>, %6, %cst_1 [0] : vector<8x16xf32> to vector<16xf32>
    %8 = vector.shape_cast %7 : vector<16xf32> to vector<1x16xf32>
    %9 = vector.broadcast %8 : vector<1x16xf32> to vector<8x16xf32>
    %10 = arith.divf %6, %9 : vector<8x16xf32>
    %11 = arith.truncf %10 : vector<8x16xf32> to vector<8x16xbf16>
    %c0_2 = arith.constant 0 : index
    %c0_3 = arith.constant 0 : index
    %12 = vector.load %arg2[%c0_2, %c0_3] : memref<8x16xbf16, #tpu.memory_space<vmem>>, vector<8x16xbf16>
    tpu.vector_store %arg2[%c0_2, %c0_3], %11 {strides = array<i32>} : memref<8x16xbf16, #tpu.memory_space<vmem>>, vector<8x16xbf16>,
    return
  }
  func.func @transform_0(%arg0: i32) -> (i32, i32) {
    %c0_i32 = arith.constant 0 : i32
    %c0_i32_0 = arith.constant 0 : i32
    return %c0_i32, %arg0 : i32, i32
  }
  func.func @transform_1(%arg0: i32) -> (i32, i32) {
    %c0_i32 = arith.constant 0 : i32
    %c0_i32_0 = arith.constant 0 : i32
    return %c0_i32, %arg0 : i32, i32
  }
}

</mosaic_0001>

<bundles_post_ra>
// kernel: _softmax_lane_dense.1
= control target key start
LH: loop header
LB: loop body
LE: loop exit
PB: predicated region body
PF: predicated region fallthrough
CT: control target
= control target key end

     0   :  { %6 = vsyncpa [#allocation3], 0  ;;  %s129_s0 = inlined_call_operand.hbm [shape: bf16[8,16], index: 0, kind: input, shape index: {}]   ;;  %s130_s1 = inlined_call_operand.hbm [shape: bf16[8,16], index: 1, kind: output, shape index: {}]  }
   0x1   :  { %7 = vsyncpa [#allocation4], 0  ;;  %s111_s6 = smov [#allocation2]  }
   0x2   :  { %s14_s7 = sshll.u32 %s111_s6, 4  ;;  %s15_s7 = int_to_ptr.vmem [resolvable:$true] %s14_s7 }
   0x3   :  { %s75_s8 = scalar_lea.vmem %s15_s7, 64  ;;  %p80_p1 = scmp.lt.s32.totalorder %s15_s7, %s15_s7 }
   0x4   :  { %p76_p0 = scmp.ne.s32.totalorder %s15_s7, %s75_s8  ;;  %p81_p2 = scmp.lt.s32.totalorder %s75_s8, %s75_s8 }
   0x6   :  { %p82_p3 = por %p81_p2, %p80_p1 }
   0x8   :  { %p83_p4 = pnand %p82_p3, %p76_p0 }
   0xa   :  { %86 = shalt.err (!%p83_p4)
}
   0xb   :  { %17 = dma.hbm_to_vmem [thread:$0]  %s129_s0, 64, %s15_s7, [#allocation3]  }
   0xc   :  { %107 = dma.done.wait [#allocation3], 64  }
   0xd   :  { %108 = vsyncadd [#allocation3], 4294967232  ;;  %v21_v0 = vld [vmem:[#allocation2] sm:$0xf]  ;;  %vm23_vm0 = vcmask 130048   ;;  %s112_s0 = smov [#allocation5]  }
   0xe   :  { %v22_v1 = vunpack.c.l.bf16 %v21_v0  ;;  %s52_s11 = sshll.u32 %s112_s0, 4  ;;  %vm44_vm1 = vcmask 125952   ;;  %s53_s11 = int_to_ptr.vmem [resolvable:$true] %s52_s11 }
   0xf   :  { %s87_s12 = scalar_lea.vmem %s53_s11, 64  ;;  %p92_p6 = scmp.lt.s32.totalorder %s53_s11, %s53_s11 }
  0x10   :  { %v24_v2 = vsel %vm23_vm0, %v22_v1, -inf  ;;  %p88_p5 = scmp.ne.s32.totalorder %s53_s11, %s87_s12  ;;  %p93_p7 = scmp.lt.s32.totalorder %s87_s12, %s87_s12 }
  0x11   :  { %v25_v3 = vrot.slane %v24_v2, 4 }
  0x12   :  { %p94_p8 = por %p93_p7, %p92_p6 }
  0x13   :  { %v26_v4 = vmax.f32 %v24_v2, %v25_v3 }
  0x14   :  { %p95_p9 = pnand %p94_p8, %p88_p5 }
  0x15   :  { %v27_v5 = vrot.slane %v26_v4, 2 }
  0x17   :  { %v28_v6 = vmax.f32 %v26_v4, %v27_v5 }
  0x19   :  { %v29_v7 = vrot.slane %v28_v6, 1 }
  0x1b   :  { %v30_v8 = vmax.f32 %v28_v6, %v29_v7 }
  0x1d   :  { %v31_v9 = vsub.f32 %v22_v1, %v30_v8 }
  0x1f   :  { %v32_v10 = vmul.f32 1.442695, %v31_v9 }
  0x21   :  { %63 = vpow2.f32 %v32_v10 }
  0x2e   :  { %v64_v11 = vpop.eup %63 }
  0x2f   :  { %v34_v12 = vsel %vm23_vm0, %v64_v11, 0.0 }
  0x30   :  { %v35_v13 = vrot.slane %v34_v12, 4 }
  0x32   :  { %v36_v14 = vadd.f32 %v35_v13, %v34_v12 }
  0x34   :  { %v37_v15 = vrot.slane %v36_v14, 2 }
  0x36   :  { %v38_v16 = vadd.f32 %v37_v15, %v36_v14 }
  0x38   :  { %v39_v17 = vrot.slane %v38_v16, 1 }
  0x3a   :  { %v40_v18 = vadd.f32 %v39_v17, %v38_v16 }
  0x3c   :  { %65 = vrcp.f32 %v40_v18 }
  0x49   :  { %v66_v19 = vpop.eup %65 }
  0x4a   :  { %v42_v20 = vmul.f32 %v66_v19, %v64_v11 }
  0x4c   :  { %v43_v21 = vpack.c.bf16 %v42_v20, %v42_v20 }
  0x4e   :  { %45 = vst.msk [vmem:[#allocation5] sm:$0xf] %vm44_vm1, %v43_v21 }
  0x4f   :  { %98 = shalt.err (!%p95_p9)
}
  0x50   :  { %55 = dma.vmem_to_hbm [thread:$0]  %s53_s11, 64, %s130_s1, [#allocation4]  }
  0x51   :  { %109 = dma.done.wait [#allocation4], 64  }
  0x52   :  { %110 = vsyncadd [#allocation4], 4294967232 }
  0x53   :  { %59 = vsyncpa [#allocation3], 1 }
  0x54   :  { %60 = vsyncpa [#allocation4], 1 }

</bundles_post_ra>
